<compile_context>
chip_gen: v5e
topology: v5e:2x2
jax: 0.10.0
libtpu: 0.0.40
codegen_flags: <defaults>
</compile_context>

<pallas_src>
import math

import jax
import jax.numpy as jnp
from jax.experimental import pallas as pl
from jax.experimental.pallas import tpu as pltpu


# ---------------------------------------------------------------------------
# Kernel: out = x * sw[0] + propogated * sw[1]; sw is already softmaxed (2,TC).
# ---------------------------------------------------------------------------
def lazy_layer_kernel(x_ref, p_ref, sw_ref, o_ref):
    x = x_ref[...].astype(jnp.float32)            # (TR, TC)
    p = p_ref[...].astype(jnp.float32)            # (TR, TC)
    sw = sw_ref[...].astype(jnp.float32)          # (2, TC), columns sum to 1
    sw0 = sw[0:1, :]                              # (1, TC) broadcasts over rows
    sw1 = sw[1:2, :]
    o_ref[...] = (x * sw0 + p * sw1).astype(o_ref.dtype)


# ---------------------------------------------------------------------------
# Tiling helpers
# ---------------------------------------------------------------------------
def _vmem_budget_and_limit():
    """(per-call block budget, vmem_limit_bytes); generation-aware but safe."""
    budget, limit = 24 << 20, 32 << 20            # safe on v7x (64 MiB physical)
    try:
        cap = int(getattr(pltpu.get_tpu_info(), "vmem_capacity_bytes", 0) or 0)
        if cap >= (96 << 20):                     # v5e / v6e: 128 MiB physical
            budget, limit = 48 << 20, 64 << 20
    except Exception:
        pass
    return budget, limit


def _pick_row_tile(rows, row_bytes, sub, block_bytes):
    """Rows per block: ~block_bytes, multiple of `sub`, and >=2 grid steps."""
    if rows <= sub:
        return rows                               # full extent is always legal
    t = max(block_bytes // max(row_bytes, 1), sub)
    t = max((min(t, rows) // sub) * sub, sub)
    # Guarantee >= 2 grid steps so both v7x TensorCores get a share.
    if t >= rows:
        t = max((((rows + 1) // 2) // sub) * sub, sub)
    return t


def _pick_lane_tile(cols, sub, itemsize, block_bytes):
    """Lane tile for very wide rows: multiple of 128, ~block_bytes per block."""
    t = block_bytes // max(sub * itemsize, 1)
    t = (min(t, cols) // 128) * 128
    return max(t, 128)


def _lazy_layer_2d(x, p, sw, *, block_bytes, vmem_budget, vmem_limit):
    """x, p: (R, C); sw: (2, C) already-softmaxed weights -> (R, C)."""
    R, C = x.shape
    itemsize = jnp.dtype(x.dtype).itemsize
    sub = 16 if itemsize == 2 else 8              # min sublane tile (bf16 packs 2x)
    row_bytes = C * itemsize
    w_full_bytes = 2 * C * jnp.dtype(sw.dtype).itemsize

    # Per-operand block cap so 3 operands x 2 buffers + resident weights (x2)
    # stay inside the VMEM budget (replaces the old fixed 4x fudge factor).
    cap_full = max((vmem_budget - 2 * w_full_bytes) // 6, 0)

    if C <= 128 or sub * row_bytes <= cap_full:
        # Full contiguous rows per block; tile only over rows (batch).
        blk = max(min(block_bytes, max(cap_full, 1)), sub * row_bytes)
        tr = _pick_row_tile(R, row_bytes, sub, blk)
        grid = (pl.cdiv(R, tr),)
        in_specs = [
            pl.BlockSpec((tr, C), lambda i: (i, 0)),    # x tile
            pl.BlockSpec((tr, C), lambda i: (i, 0)),    # propogated tile
            pl.BlockSpec((2, C), lambda i: (0, 0)),     # weights (resident)
        ]
        out_specs = pl.BlockSpec((tr, C), lambda i: (i, 0))
        dims = ("parallel",)
    else:
        # Very wide rows: also tile the lane axis in multiples of 128.
        blk = max(min(block_bytes, vmem_budget // 7), sub * 128 * itemsize)
        tc = _pick_lane_tile(C, sub, itemsize, blk)
        tr = _pick_row_tile(R, tc * itemsize, sub, blk)
        grid = (pl.cdiv(R, tr), pl.cdiv(C, tc))
        in_specs = [
            pl.BlockSpec((tr, tc), lambda i, j: (i, j)),
            pl.BlockSpec((tr, tc), lambda i, j: (i, j)),
            pl.BlockSpec((2, tc), lambda i, j: (0, j)),
        ]
        out_specs = pl.BlockSpec((tr, tc), lambda i, j: (i, j))
        dims = ("parallel", "parallel")

    return pl.pallas_call(
        lazy_layer_kernel,
        out_shape=jax.ShapeDtypeStruct((R, C), x.dtype),
        grid_spec=pltpu.PrefetchScalarGridSpec(
            num_scalar_prefetch=0,
            grid=grid,
            in_specs=in_specs,
            out_specs=out_specs,
        ),
        compiler_params=pltpu.CompilerParams(
            dimension_semantics=dims,
            vmem_limit_bytes=vmem_limit,
        ),
    )(x, p, sw)


def _fold_narrow(x, p, sw, B, N):
    """Fold (B, N) with N < 128 onto lane-dense rows of width L where
    L % N == 0 and L % 128 == 0, zero-padding the flat tail."""
    total = B * N
    base = (N * 128) // math.gcd(N, 128)          # lcm(N, 128)
    reps = max(1, min(total // base, max(1, 4096 // base)))
    L = base * reps
    R = pl.cdiv(total, L)
    pad = R * L - total

    def fold(a):
        a = a.reshape(-1)
        if pad:
            a = jnp.pad(a, (0, pad))
        return a.reshape(R, L)

    sw_l = jnp.tile(sw, (1, L // N))              # column c uses sw[:, c % N]
    return fold(x), fold(p), sw_l, pad


# ---------------------------------------------------------------------------
# Public wrapper
# ---------------------------------------------------------------------------
def lazy_layer(x, propogated, weights, *, block_bytes=None,
               min_kernel_bytes=256 << 10):
    """x, propogated: (B, N); weights: (2, N) raw laziness params -> (B, N).

    block_bytes: target per-operand block footprint (default ~4 MiB, capped by
      a VMEM-budget-derived limit so 3 operands x 2 buffers + weights always
      fit every generation's VMEM, including v7x's 64 MiB).
    min_kernel_bytes: below this per-operand size, use plain fused XLA (the
      pallas_call dispatch overhead dwarfs <1 us of streaming).
    """
    B, N = x.shape
    itemsize = jnp.dtype(x.dtype).itemsize

    if B * N * itemsize < min_kernel_bytes:
        return lazy_layer_ref(x, propogated, weights)

    vmem_budget, vmem_limit = _vmem_budget_and_limit()
    if block_bytes is None:
        block_bytes = min(4 << 20, vmem_budget // 6)

    # Exact per-channel softmax, computed once outside the kernel (the op is
    # memory-bound; this is free and keeps bit-level parity with the module).
    sw = jax.nn.softmax(weights.astype(jnp.float32), axis=0)   # (2, N)

    if N < 128:
        # Lane-dense fold (generalized: works for any N via zero padding).
        xf, pf, swf, pad = _fold_narrow(x, propogated, sw, B, N)
        out = _lazy_layer_2d(xf, pf, swf, block_bytes=block_bytes,
                             vmem_budget=vmem_budget, vmem_limit=vmem_limit)
        out = out.reshape(-1)
        if pad:
            out = out[: B * N]
        return out.reshape(B, N)

    return _lazy_layer_2d(x, propogated, sw, block_bytes=block_bytes,
                          vmem_budget=vmem_budget, vmem_limit=vmem_limit)


def lazy_layer_ref(x, propogated, weights):
    """Pure-JAX reference mirroring the PyTorch forward."""
    inp = jnp.stack((x, propogated), axis=1)            # (B, 2, N)
    sw = jax.nn.softmax(weights, axis=0)                # (2, N)
    return jnp.sum(inp * sw, axis=-2)                   # (B, N)


if __name__ == "__main__":
    tol = dict(atol=1e-5, rtol=1e-5)

    # 1) Toy BLIS-Net shape (B=4 graphs, n=32 nodes) -> folded lane-dense path.
    kx, kp, kw = jax.random.split(jax.random.PRNGKey(0), 3)
    B, N = 4, 32
    x = jax.random.normal(kx, (B, N), dtype=jnp.float32)
    propogated = jax.random.normal(kp, (B, N), dtype=jnp.float32)
    weights = jax.random.normal(kw, (2, N), dtype=jnp.float32)
    out = jax.block_until_ready(
        lazy_layer(x, propogated, weights, min_kernel_bytes=0))
    ref = lazy_layer_ref(x, propogated, weights)
    assert out.shape == (B, N), out.shape
    assert jnp.allclose(out, ref, **tol), (
        f"max abs err {jnp.max(jnp.abs(out - ref))}")

    # 2) Row-tiled path with a multi-step (pipelined) grid.
    kx2, kp2, kw2 = jax.random.split(jax.random.PRNGKey(1), 3)
    B2, N2 = 64, 256
    x2 = jax.random.normal(kx2, (B2, N2), dtype=jnp.float32)
    p2 = jax.random.normal(kp2, (B2, N2), dtype=jnp.float32)
    w2 = jax.random.normal(kw2, (2, N2), dtype=jnp.float32)
    out2 = jax.block_until_ready(
        lazy_layer(x2, p2, w2, block_bytes=16 << 10, min_kernel_bytes=0))
    assert jnp.allclose(out2, lazy_layer_ref(x2, p2, w2), **tol), (
        f"max abs err {jnp.max(jnp.abs(out2 - lazy_layer_ref(x2, p2, w2)))}")

    # 3) Wide-row path (row + lane grid axes) exercised via a tiny forced
    #    VMEM budget so the small test shape takes the lane-tiled branch.
    kx3, kp3, kw3 = jax.random.split(jax.random.PRNGKey(2), 3)
    B3, N3 = 8, 512
    x3 = jax.random.normal(kx3, (B3, N3), dtype=jnp.float32)
    p3 = jax.random.normal(kp3, (B3, N3), dtype=jnp.float32)
    w3 = jax.random.normal(kw3, (2, N3), dtype=jnp.float32)
    sw3 = jax.nn.softmax(w3.astype(jnp.float32), axis=0)
    out3 = jax.block_until_ready(
        _lazy_layer_2d(x3, p3, sw3, block_bytes=2 << 10,
                       vmem_budget=48 << 10, vmem_limit=32 << 20))
    assert jnp.allclose(out3, lazy_layer_ref(x3, p3, w3), **tol)

    # 4) Narrow N that cannot evenly lane-fold (128 % 48 != 0, B*N % 128 != 0):
    #    generalized zero-padded fold.
    kx4, kp4, kw4 = jax.random.split(jax.random.PRNGKey(3), 3)
    B4, N4 = 5, 48
    x4 = jax.random.normal(kx4, (B4, N4), dtype=jnp.float32)
    p4 = jax.random.normal(kp4, (B4, N4), dtype=jnp.float32)
    w4 = jax.random.normal(kw4, (2, N4), dtype=jnp.float32)
    out4 = jax.block_until_ready(
        lazy_layer(x4, p4, w4, min_kernel_bytes=0))
    assert out4.shape == (B4, N4)
    assert jnp.allclose(out4, lazy_layer_ref(x4, p4, w4), **tol)

    print("KERNEL_OK")
</pallas_src>

<mosaic_0001>
module attributes {stable_mosaic.version = 11 : i64} {
  func.func @lazy_layer_kernel(%arg0: i32, %arg1: memref<1x128xf32, #tpu.memory_space<vmem>>, %arg2: memref<1x128xf32, #tpu.memory_space<vmem>>, %arg3: memref<2x128xf32, #tpu.memory_space<vmem>>, %arg4: memref<1x128xf32, #tpu.memory_space<vmem>>) attributes {dimension_semantics = [#tpu.dimension_semantics<parallel>], iteration_bounds = array<i64: 1>, scalar_prefetch = 0 : i64, scratch_operands = 0 : i64, tpu.core_type = #tpu.core_type<tc>, window_params = [{transform_indices = @transform_0, window_bounds = array<i64: 1, 128>}, {transform_indices = @transform_1, window_bounds = array<i64: 1, 128>}, {pipeline_mode = #tpu.pipeline_mode<synchronous>, transform_indices = @transform_2, window_bounds = array<i64: 2, 128>}, {transform_indices = @transform_3, window_bounds = array<i64: 1, 128>}]} {
    %c0 = arith.constant 0 : index
    %c0_0 = arith.constant 0 : index
    %0 = vector.load %arg1[%c0, %c0_0] : memref<1x128xf32, #tpu.memory_space<vmem>>, vector<1x128xf32>
    %c0_1 = arith.constant 0 : index
    %c0_2 = arith.constant 0 : index
    %1 = vector.load %arg2[%c0_1, %c0_2] : memref<1x128xf32, #tpu.memory_space<vmem>>, vector<1x128xf32>
    %c0_3 = arith.constant 0 : index
    %c0_4 = arith.constant 0 : index
    %2 = vector.load %arg3[%c0_3, %c0_4] : memref<2x128xf32, #tpu.memory_space<vmem>>, vector<2x128xf32>
    %3 = vector.extract_strided_slice %2 {offsets = [0, 0], sizes = [1, 128], strides = [1, 1]} : vector<2x128xf32> to vector<1x128xf32>
    %4 = vector.extract_strided_slice %2 {offsets = [1, 0], sizes = [1, 128], strides = [1, 1]} : vector<2x128xf32> to vector<1x128xf32>
    %5 = arith.mulf %0, %3 : vector<1x128xf32>
    %6 = arith.mulf %1, %4 : vector<1x128xf32>
    %7 = arith.addf %5, %6 : vector<1x128xf32>
    %c0_5 = arith.constant 0 : index
    %c0_6 = arith.constant 0 : index
    %8 = vector.load %arg4[%c0_5, %c0_6] : memref<1x128xf32, #tpu.memory_space<vmem>>, vector<1x128xf32>
    tpu.vector_store %arg4[%c0_5, %c0_6], %7 {strides = array<i32>} : memref<1x128xf32, #tpu.memory_space<vmem>>, vector<1x128xf32>,
    return
  }
  func.func @transform_0(%arg0: i32) -> (i32, i32) {
    %c0_i32 = arith.constant 0 : i32
    %c0_i32_0 = arith.constant 0 : i32
    return %arg0, %c0_i32 : i32, i32
  }
  func.func @transform_1(%arg0: i32) -> (i32, i32) {
    %c0_i32 = arith.constant 0 : i32
    %c0_i32_0 = arith.constant 0 : i32
    return %arg0, %c0_i32 : i32, i32
  }
  func.func @transform_2(%arg0: i32) -> (i32, i32) {
    %c0_i32 = arith.constant 0 : i32
    %c0_i32_0 = arith.constant 0 : i32
    %c0_i32_1 = arith.constant 0 : i32
    return %c0_i32, %c0_i32_0 : i32, i32
  }
  func.func @transform_3(%arg0: i32) -> (i32, i32) {
    %c0_i32 = arith.constant 0 : i32
    %c0_i32_0 = arith.constant 0 : i32
    return %arg0, %c0_i32 : i32, i32
  }
}

</mosaic_0001>

<bundles_post_ra>
// kernel: tpu_custom_call.1
= control target key start
LH: loop header
LB: loop body
LE: loop exit
PB: predicated region body
PF: predicated region fallthrough
CT: control target
= control target key end

     0   :  { %8 = vsyncpa [#allocation3], 0  ;;  %s228_s0 = inlined_call_operand.hbm [shape: f32[1,128], index: 0, kind: input, shape index: {}]   ;;  %s229_s1 = inlined_call_operand.hbm [shape: f32[1,128], index: 1, kind: input, shape index: {}]   ;;  %s230_s2 = inlined_call_operand.hbm [shape: f32[2,128], index: 2, kind: input, shape index: {}]   ;;  %s231_s3 = inlined_call_operand.hbm [shape: f32[1,128], index: 3, kind: output, shape index: {}]  }
   0x1   :  { %9 = vsyncpa [#allocation6], 0  ;;  %s27_s14 = sshll.u32 %s229_s1, 4  ;;  %s28_s14 = int_to_ptr.hbm [resolvable:$true] %s27_s14 }
   0x2   :  { %10 = vsyncpa [#allocation4], 0  ;;  %s192_s15 = smov [#allocation5]   ;;  %s16_s19 = sshll.u32 %s228_s0, 4  ;;  %s17_s19 = int_to_ptr.hbm [resolvable:$true] %s16_s19 }
   0x3   :  { %s29_s16 = sshll.u32 %s192_s15, 4  ;;  %s193_s20 = smov [#allocation2]   ;;  %s30_s16 = int_to_ptr.vmem [resolvable:$true] %s29_s16 }
   0x4   :  { %32 = dma.hbm_to_vmem [thread:$0]  %s28_s14, 16, %s30_s16, [#allocation6]  }
   0x5   :  { %s18_s21 = sshll.u32 %s193_s20, 4  ;;  %s38_s24 = sshll.u32 %s230_s2, 4  ;;  %s19_s21 = int_to_ptr.vmem [resolvable:$true] %s18_s21  ;;  %s39_s24 = int_to_ptr.hbm [resolvable:$true] %s38_s24 }
   0x6   :  { %21 = dma.hbm_to_vmem [thread:$0]  %s17_s19, 16, %s19_s21, [#allocation3]  }
   0x7   :  { %s194_s1 = smov [#allocation7]  }
   0x8   :  { %s40_s25 = sshll.u32 %s194_s1, 4  ;;  %s41_s25 = int_to_ptr.vmem [resolvable:$true] %s40_s25 }
   0x9   :  { %43 = dma.hbm_to_vmem [thread:$0]  %s39_s24, 32, %s41_s25, [#allocation6]  }
   0xa   :  { %186 = dma.done.wait [#allocation3], 16  }
   0xb   :  { %187 = vsyncadd [#allocation3], 4294967280 }
   0xc   :  { %188 = dma.done.wait [#allocation6], 48  }
   0xd   :  { %189 = vsyncadd [#allocation6], 4294967248  ;;  %v58_v0 = vld [vmem:[#allocation7] sm:$0x3]  ;;  %v56_v1 = vld [vmem:[#allocation2] sm:$0x1] }
   0xe   :  { %61 = vst [vmem:[#allocation1] sm:$0xff] %v58_v0  ;;  %v57_v2 = vld [vmem:[#allocation5] sm:$0x1]  ;;  %v59_v3 = vmul.f32 %v58_v0, %v56_v1  ;;  %s195_s0 = smov [#allocation8]   ;;  %s75_s28 = sshll.u32 %s231_s3, 4  ;;  %s76_s28 = int_to_ptr.hbm [resolvable:$true] %s75_s28 }
   0xf   :  { %s73_s26 = sshll.u32 %s195_s0, 4  ;;  %s74_s26 = int_to_ptr.vmem [resolvable:$true] %s73_s26 }
  0x15   :  { %v63_v4 = vld [vmem:[#allocation1 + $0x1] ss:$9 sm:$0xff] }
  0x16   :  { %v65_v5 = vmul.f32 %v63_v4, %v57_v2 }
  0x18   :  { %v66_v6 = vadd.f32 %v65_v5, %v59_v3 }
  0x1a   :  { %67 = vst [vmem:[#allocation8] sm:$0x1] %v66_v6 }
  0x1b   :  { %78 = dma.vmem_to_hbm [thread:$0]  %s74_s26, 16, %s76_s28, [#allocation4]  }
  0x1c   :  { %190 = dma.done.wait [#allocation4], 16  }
  0x1d   :  { %191 = vsyncadd [#allocation4], 4294967280 }
  0x1e   :  { %83 = vsyncpa [#allocation3], 1 }
  0x1f   :  { %84 = vsyncpa [#allocation6], 1 }
  0x20   :  { %85 = vsyncpa [#allocation4], 1 }

</bundles_post_ra>
